<compile_context>
chip_gen: v7x
topology: tpu7x:2x2x1
jax: 0.10.0
libtpu: 0.0.40
codegen_flags: <defaults>
</compile_context>

<pallas_src>
import math
import functools

import jax
import jax.numpy as jnp
from jax.experimental import pallas as pl
from jax.experimental.pallas import tpu as pltpu


# Fast path is used when the padded table fits comfortably in VMEM.
SMALL_TABLE_BYTES = 4 << 20


def _round_up(x, m):
    return ((x + m - 1) // m) * m


def _vmem_capacity_bytes():
    """Per-core VMEM capacity; conservative fallback if the query fails."""
    try:
        return int(pltpu.get_tpu_info().vmem_capacity_bytes)
    except Exception:
        return 64 << 20          # v7x has the smallest VMEM (64 MiB)


def _pick_tile_rows(total_rows, max_rows, sub):
    """Largest tr dividing total_rows, multiple of `sub`, and <= max_rows."""
    assert total_rows % sub == 0, (
        f"S*B={total_rows} must be a multiple of the sublane tile ({sub})")
    max_rows = max(sub, min(int(max_rows), total_rows))
    max_rows = (max_rows // sub) * sub
    t = max_rows
    while t > sub:
        if total_rows % t == 0:
            return t
        t -= sub
    return sub


# ---------------------------------------------------------------------------
# Small-vocab fast path: VMEM-resident table + one-hot MXU lookup.
# ---------------------------------------------------------------------------
def _small_vocab_kernel(ids_ref, pe_ref, table_ref, out_ref):
    """ids_ref: (tr, 1) i32; pe_ref: (tr, D_pad) f32; table_ref: (V_pad, D_pad)
    resident in VMEM; out_ref: (tr, D_pad)."""
    ids = ids_ref[...]                                        # (tr, 1)
    tr = ids.shape[0]
    v_pad = table_ref.shape[0]
    iota = jax.lax.broadcasted_iota(jnp.int32, (tr, v_pad), 1)
    onehot = (iota == ids).astype(table_ref.dtype)            # (tr, V_pad)
    # One-hot row-select on the (otherwise idle) MXU.  HIGHEST precision keeps
    # the f32 lookup near-exact (multi-pass bf16 decomposition).
    emb = jnp.dot(onehot, table_ref[...],
                  preferred_element_type=jnp.float32,
                  precision=jax.lax.Precision.HIGHEST)        # (tr, D_pad)
    out_ref[...] = (emb + pe_ref[...].astype(jnp.float32)).astype(out_ref.dtype)


@functools.partial(jax.jit, static_argnames=("d_model", "num_vocabs", "out_dtype"))
def _embedding_forward_small(x, table_pad, pe_pad, *, d_model, num_vocabs,
                             out_dtype):
    S, B = x.shape
    v_pad, d_pad = table_pad.shape
    total = S * B
    assert S <= pe_pad.shape[0], "sequence length exceeds max_len of PE buffer"

    itemsize = table_pad.dtype.itemsize
    out_itemsize = jnp.dtype(out_dtype).itemsize
    sub = 8 * (4 // max(min(itemsize, out_itemsize), 1))      # f32:8, bf16:16

    cap = _vmem_capacity_bytes()
    vmem_limit = (cap * 3) // 4
    table_bytes = v_pad * d_pad * itemsize
    # Per tile-row VMEM estimate: one-hot + emb/pe/out (double-buffered) + ids.
    per_row = 4 * v_pad + d_pad * (4 + 8 + 2 * out_itemsize + 4) + 8
    avail = max(per_row * sub, vmem_limit // 2 - 2 * table_bytes)
    tr = _pick_tile_rows(total, avail // per_row, sub)
    n_tiles = total // tr

    # Clamp ids (PyTorch would raise on OOB; clamping keeps the DMA/MXU safe).
    ids_col = jnp.clip(x.reshape(total).astype(jnp.int32),
                       0, num_vocabs - 1).reshape(total, 1)
    # PE pre-expanded over batch -> plain tile add in the kernel (no in-kernel
    # broadcast/reshape layout work).
    pe_flat = jnp.broadcast_to(pe_pad[:S, None, :],
                               (S, B, d_pad)).reshape(total, d_pad)

    out_flat = pl.pallas_call(
        _small_vocab_kernel,
        out_shape=jax.ShapeDtypeStruct((total, d_pad), out_dtype),
        grid_spec=pltpu.PrefetchScalarGridSpec(
            num_scalar_prefetch=0,
            grid=(n_tiles,),
            in_specs=[
                pl.BlockSpec((tr, 1), lambda i: (i, 0)),
                pl.BlockSpec((tr, d_pad), lambda i: (i, 0)),
                pl.BlockSpec((v_pad, d_pad), lambda i: (0, 0)),   # resident
            ],
            out_specs=pl.BlockSpec((tr, d_pad), lambda i: (i, 0)),
        ),
        compiler_params=pltpu.CompilerParams(
            dimension_semantics=("parallel",),
            vmem_limit_bytes=vmem_limit),
    )(ids_col, pe_flat, table_pad)

    out = out_flat.reshape(S, B, d_pad)
    if d_pad != d_model:
        # Extra HBM pass; consumers that accept the padded slab should skip it.
        out = out[..., :d_model]
    return out


# ---------------------------------------------------------------------------
# Large-vocab path: HBM-resident table + double-buffered per-row DMA gather.
# ---------------------------------------------------------------------------
def _gather_kernel(n_inner, tr, full_unroll,
                   ids_ref, pe_ref, table_ref, out_ref, rows_ref, sem_ref):
    """ids_ref: SMEM (S*B,) i32 (scalar prefetch); pe_ref: VMEM (tr, D_pad);
    table_ref: HBM (V, D_pad); out_ref: VMEM (tr, D_pad);
    rows_ref: VMEM (2, tr, D_pad); sem_ref: DMA sems (2,)."""
    o = pl.program_id(0)
    i = pl.program_id(1)

    def one_copy(tile_idx, slot, t):
        row = ids_ref[tile_idx * tr + t]
        pltpu.make_async_copy(table_ref.at[row],
                              rows_ref.at[slot, t],
                              sem_ref.at[slot]).start()

    def issue(tile_idx, slot):
        if full_unroll:
            for t in range(tr):
                one_copy(tile_idx, slot, t)
        else:
            @pl.loop(0, tr, step=8)              # unroll-by-8 DMA issue
            def _(t):
                for u in range(8):
                    one_copy(tile_idx, slot, t + u)

    # First inner step of each outer chunk: nothing is in flight yet.
    @pl.when(i == 0)
    def _():
        issue(o * n_inner, 0)

    # Prefetch the next tile's rows into the other buffer while we finish this
    # one (the chain stays within the sequential inner axis).
    @pl.when(i + 1 < n_inner)
    def _():
        issue(o * n_inner + i + 1, (i + 1) % 2)

    slot = i % 2

    # Drain the current slot.  NOTE: every copy into sem_ref[slot] is exactly
    # one table row of D_pad * itemsize bytes, so waiting with an equal-sized
    # dummy descriptor tr times drains the semaphore exactly.  Do not mix
    # differently-sized copies onto this semaphore.
    def drain(t):
        pltpu.make_async_copy(table_ref.at[0],
                              rows_ref.at[slot, t],
                              sem_ref.at[slot]).wait()

    if full_unroll:
        for t in range(tr):
            drain(t)
    else:
        @pl.loop(0, tr, step=8)
        def _(t):
            for u in range(8):
                drain(t + u)

    # Dropout == identity (eval mode).
    out_ref[...] = (rows_ref[slot].astype(jnp.float32)
                    + pe_ref[...].astype(jnp.float32)).astype(out_ref.dtype)


@functools.partial(jax.jit,
                   static_argnames=("d_model", "num_vocabs", "out_dtype", "outer"))
def _embedding_forward_gather(x, table_pad, pe_pad, *, d_model, num_vocabs,
                              out_dtype, outer):
    S, B = x.shape
    _, d_pad = table_pad.shape
    total = S * B
    assert S <= pe_pad.shape[0], "sequence length exceeds max_len of PE buffer"
    # Scalar-prefetched ids live in SMEM (pads to next_pow2(4*S*B) bytes).
    assert total <= (1 << 16), (
        "S*B too large for a single flat SMEM id prefetch; prefetch ids per "
        "outer chunk instead")

    itemsize = table_pad.dtype.itemsize
    out_itemsize = jnp.dtype(out_dtype).itemsize
    sub = 8 * (4 // max(min(itemsize, out_itemsize), 1))      # f32:8, bf16:16

    cap = _vmem_capacity_bytes()
    vmem_limit = (cap * 3) // 4                  # 48 MiB on v7x, 96 MiB on v5e/v6e
    # Per tile-row VMEM: gather double-buffer + pe/out double-buffers + temps.
    per_row = d_pad * (2 * itemsize + 8 + 2 * out_itemsize + 8)
    tr = _pick_tile_rows(total, (vmem_limit // 2) // per_row, sub)

    n_tiles = total // tr
    if n_tiles % outer != 0:
        outer = 1
    n_inner = n_tiles // outer

    ids_flat = jnp.clip(x.reshape(total).astype(jnp.int32), 0, num_vocabs - 1)
    pe_flat = jnp.broadcast_to(pe_pad[:S, None, :],
                               (S, B, d_pad)).reshape(total, d_pad)

    kernel = functools.partial(_gather_kernel, n_inner, tr, tr <= 256)

    out_flat = pl.pallas_call(
        kernel,
        out_shape=jax.ShapeDtypeStruct((total, d_pad), out_dtype),
        grid_spec=pltpu.PrefetchScalarGridSpec(
            num_scalar_prefetch=1,
            grid=(outer, n_inner),
            in_specs=[
                pl.BlockSpec((tr, d_pad), lambda o, i, ids: (o * n_inner + i, 0)),
                pl.BlockSpec(memory_space=pl.ANY),       # table stays in HBM
            ],
            out_specs=pl.BlockSpec((tr, d_pad),
                                   lambda o, i, ids: (o * n_inner + i, 0)),
            scratch_shapes=[
                pltpu.VMEM((2, tr, d_pad), table_pad.dtype),   # gather dbl buf
                pltpu.SemaphoreType.DMA((2,)),
            ]),
        compiler_params=pltpu.CompilerParams(
            dimension_semantics=("parallel", "arbitrary"),
            vmem_limit_bytes=vmem_limit),
    )(ids_flat, pe_flat, table_pad)

    out = out_flat.reshape(S, B, d_pad)
    if d_pad != d_model:
        out = out[..., :d_model]
    return out


# ---------------------------------------------------------------------------
# Public API.
# ---------------------------------------------------------------------------
def make_positional_encoding(d_model: int, max_len: int) -> jnp.ndarray:
    """Matches PositionalEncoding buffer `pe` (squeezed to (max_len, d_model))."""
    position = jnp.arange(max_len, dtype=jnp.float32)[:, None]
    div_term = jnp.exp(jnp.arange(0, d_model, 2, dtype=jnp.float32)
                       * (-math.log(10000.0) / d_model))
    angles = position * div_term
    pe = jnp.zeros((max_len, d_model), dtype=jnp.float32)
    pe = pe.at[:, 0::2].set(jnp.sin(angles))
    pe = pe.at[:, 1::2].set(jnp.cos(angles))
    return pe


def prepare_embedding_params(table, pe, *, small_table_bytes=SMALL_TABLE_BYTES):
    """One-time init: pad table/PE to lane-dense shapes (hoisted out of the
    per-call path) and pick the lookup strategy from the padded table size."""
    V, D = table.shape
    d_pad = _round_up(D, 128)
    v_pad = _round_up(V, 128)
    fast = v_pad * d_pad * table.dtype.itemsize <= small_table_bytes
    if d_pad != D:
        table = jnp.pad(table, ((0, 0), (0, d_pad - D)))
        pe = jnp.pad(pe, ((0, 0), (0, d_pad - D)))
    if fast and v_pad != V:
        table = jnp.pad(table, ((0, v_pad - V), (0, 0)))
    return {"table": table, "pe": pe.astype(jnp.float32),
            "num_vocabs": V, "d_model": D, "fast": fast}


def embedding_forward(x, params, *, out_dtype=None, outer=1, force_gather=False):
    """x: (S, B) int token ids -> (S, B, d_model) = table[x] + pe[:S] (broadcast
    over batch).  Eval-mode dropout == identity.  Set outer=2 on v7x megacore."""
    out_dtype = jnp.dtype(params["table"].dtype if out_dtype is None
                          else out_dtype)
    if params["fast"] and not force_gather:
        return _embedding_forward_small(
            x, params["table"], params["pe"],
            d_model=params["d_model"], num_vocabs=params["num_vocabs"],
            out_dtype=out_dtype)
    return _embedding_forward_gather(
        x, params["table"], params["pe"],
        d_model=params["d_model"], num_vocabs=params["num_vocabs"],
        out_dtype=out_dtype, outer=outer)


if __name__ == "__main__":
    # Small shapes consistent with the module.
    num_vocabs = 64
    d_model = 32
    max_len = 512
    S, B = 32, 4

    key = jax.random.PRNGKey(0)
    k_ids, k_tab = jax.random.split(key)

    x = jax.random.randint(k_ids, (S, B), 0, num_vocabs, dtype=jnp.int32)
    # nn.Embedding default init ~ N(0, 1); deterministic synthetic weights.
    table = jax.random.normal(k_tab, (num_vocabs, d_model), dtype=jnp.float32)
    pe = make_positional_encoding(d_model, max_len)

    params = prepare_embedding_params(table, pe)   # padding done ONCE here

    # Pure-JAX reference (eval-mode dropout == identity).
    ref = table[x] + pe[:S][:, None, :]

    # 1) Small-vocab fast path: VMEM-resident table + one-hot MXU lookup.
    out_fast = jax.block_until_ready(embedding_forward(x, params))
    assert out_fast.shape == (S, B, d_model)
    # MXU f32 lookup uses a multi-pass bf16 decomposition -> ~1e-5-level error.
    assert jnp.allclose(out_fast, ref, atol=1e-4, rtol=1e-4)

    # 2) Large-vocab path (forced): HBM table + per-row DMA gather.
    out_gather = jax.block_until_ready(
        embedding_forward(x, params, force_gather=True))
    assert out_gather.shape == (S, B, d_model)
    assert jnp.allclose(out_gather, ref, atol=1e-5, rtol=1e-5)

    print("KERNEL_OK")
</pallas_src>

<mosaic_0001>
module attributes {stable_mosaic.version = 11 : i64} {
  func.func @_small_vocab_kernel(%arg0: i32, %arg1: memref<128x1xi32, #tpu.memory_space<vmem>>, %arg2: memref<128x128xf32, #tpu.memory_space<vmem>>, %arg3: memref<128x128xf32, #tpu.memory_space<vmem>>, %arg4: memref<128x128xf32, #tpu.memory_space<vmem>>) attributes {dimension_semantics = [#tpu.dimension_semantics<parallel>], iteration_bounds = array<i64: 1>, scalar_prefetch = 0 : i64, scratch_operands = 0 : i64, tpu.core_type = #tpu.core_type<tc>, window_params = [{transform_indices = @transform_0, window_bounds = array<i64: 128, 1>}, {transform_indices = @transform_1, window_bounds = array<i64: 128, 128>}, {pipeline_mode = #tpu.pipeline_mode<synchronous>, transform_indices = @transform_2, window_bounds = array<i64: 128, 128>}, {transform_indices = @transform_3, window_bounds = array<i64: 128, 128>}]} {
    %c0 = arith.constant 0 : index
    %c0_0 = arith.constant 0 : index
    %0 = vector.load %arg1[%c0, %c0_0] : memref<128x1xi32, #tpu.memory_space<vmem>>, vector<128x1xi32>
    %1 = tpu.iota {dimensions = array<i32: 1>} : vector<128x128xi32>
    %2 = vector.broadcast %0 : vector<128x1xi32> to vector<128x128xi32>
    %3 = arith.cmpi eq, %1, %2 : vector<128x128xi32>
    %4 = arith.extui %3 : vector<128x128xi1> to vector<128x128xi32>
    %5 = arith.sitofp %4 : vector<128x128xi32> to vector<128x128xf32>
    %c0_1 = arith.constant 0 : index
    %c0_2 = arith.constant 0 : index
    %6 = vector.load %arg3[%c0_1, %c0_2] : memref<128x128xf32, #tpu.memory_space<vmem>>, vector<128x128xf32>
    %cst = arith.constant dense<0.000000e+00> : vector<128x128xf32>
    %7 = tpu.matmul %5, %6, %cst {dimension_numbers = #tpu.dot_dimension_numbers<[1], [0], [0], [1], [0, 0, 1, 1], [], []>, precision = #tpu.contract_precision<fp32>} : vector<128x128xf32>, vector<128x128xf32>, vector<128x128xf32> -> vector<128x128xf32>
    %c0_3 = arith.constant 0 : index
    %c0_4 = arith.constant 0 : index
    %8 = vector.load %arg2[%c0_3, %c0_4] : memref<128x128xf32, #tpu.memory_space<vmem>>, vector<128x128xf32>
    %9 = arith.addf %7, %8 : vector<128x128xf32>
    %c0_5 = arith.constant 0 : index
    %c0_6 = arith.constant 0 : index
    %10 = vector.load %arg4[%c0_5, %c0_6] : memref<128x128xf32, #tpu.memory_space<vmem>>, vector<128x128xf32>
    tpu.vector_store %arg4[%c0_5, %c0_6], %9 {strides = array<i32>} : memref<128x128xf32, #tpu.memory_space<vmem>>, vector<128x128xf32>,
    return
  }
  func.func @transform_0(%arg0: i32) -> (i32, i32) {
    %c0_i32 = arith.constant 0 : i32
    %c0_i32_0 = arith.constant 0 : i32
    return %arg0, %c0_i32 : i32, i32
  }
  func.func @transform_1(%arg0: i32) -> (i32, i32) {
    %c0_i32 = arith.constant 0 : i32
    %c0_i32_0 = arith.constant 0 : i32
    return %arg0, %c0_i32 : i32, i32
  }
  func.func @transform_2(%arg0: i32) -> (i32, i32) {
    %c0_i32 = arith.constant 0 : i32
    %c0_i32_0 = arith.constant 0 : i32
    %c0_i32_1 = arith.constant 0 : i32
    return %c0_i32, %c0_i32_0 : i32, i32
  }
  func.func @transform_3(%arg0: i32) -> (i32, i32) {
    %c0_i32 = arith.constant 0 : i32
    %c0_i32_0 = arith.constant 0 : i32
    return %arg0, %c0_i32 : i32, i32
  }
}

</mosaic_0001>

<bundles_post_ra>
// kernel: _embedding_forward_small.1
= control target key start
LH: loop header
LB: loop body
LE: loop exit
PB: predicated region body
PF: predicated region fallthrough
CT: control target
= control target key end

     0   :  { %v2391_v2 = vmov 0   ;;  %s3238_s0 = inlined_call_operand.vmem [shape: s32[128,1], index: 0, kind: input, shape index: {}]   ;;  %s3239_s1 = inlined_call_operand.vmem [shape: f32[128,128], index: 1, kind: input, shape index: {}]   ;;  %s3240_s2 = inlined_call_operand.vmem [shape: f32[128,128], index: 2, kind: input, shape index: {}]   ;;  %s3241_s3 = inlined_call_operand.hbm [shape: f32[128,128], index: 3, kind: output, shape index: {}]  }
   0x1   :  { %v17_v0 = vld [vmem:[%s3238_s0 + $0x10] sm:$0xff]  ;;  %v15_v1 = vld [vmem:[%s3238_s0] sm:$0xff]  ;;  %2366 = vset.pattern.permute.xlu1 %v2391_v2  ;;  %2365 = vset.pattern.permute.xlu0 %v2391_v2  ;;  %v18_v3 = vld [vmem:[%s3238_s0 + $0x18] sm:$0xff] }
   0x2   :  { %40 = vperm.xlu1 %2366, %v17_v0   ;;  %34 = vperm.xlu0 %2365, %v15_v1   ;;  %v16_v4 = vld [vmem:[%s3238_s0 + $0x8] sm:$0xff]  ;;  %v2432_v5 = vld [vmem:[%s3240_s2] sm:$0xff]  ;;  %v131_v9 = vld [vmem:[%s3240_s2 + $0x10] sm:$0xff] }
   0x3   :  { %v2437_v6 = vld [vmem:[%s3240_s2 + $0x8] sm:$0xff]  ;;  %v162_v7 = vand.u32 4294901760, %v2432_v5  ;;  %v132_v10 = vld [vmem:[%s3240_s2 + $0x18] sm:$0xff]  ;;  %v133_v11 = vld [vmem:[%s3240_s2 + $0x20] sm:$0xff]  ;;  %v168_v14 = vand.u32 4294901760, %v131_v9 }
   0x4   :  { %v165_v8 = vand.u32 4294901760, %v2437_v6  ;;  %v20_v12 = vld [vmem:[%s3238_s0 + $0x28] sm:$0xff]  ;;  %v19_v13 = vld [vmem:[%s3238_s0 + $0x20] sm:$0xff]  ;;  %v171_v15 = vand.u32 4294901760, %v132_v10  ;;  %v174_v19 = vand.u32 4294901760, %v133_v11  ;;  %v135_v21 = vld [vmem:[%s3240_s2 + $0x30] sm:$0xff] }
   0x5   :  { %v134_v16 = vld [vmem:[%s3240_s2 + $0x28] sm:$0xff]  ;;  %v136_v22 = vld [vmem:[%s3240_s2 + $0x38] sm:$0xff] }
   0x6   :  { %43 = vperm.xlu1 %2366, %v18_v3   ;;  %37 = vperm.xlu0 %2365, %v16_v4   ;;  %v2463_v17 = vpack.c.bf16 %v165_v8, %v162_v7  ;;  %v2465_v18 = vpack.c.bf16 %v171_v15, %v168_v14  ;;  %v177_v20 = vand.u32 4294901760, %v134_v16 }
   0xa   :  { %49 = vperm.xlu1 %2366, %v20_v12   ;;  %46 = vperm.xlu0 %2365, %v19_v13  }
   0xb   :  { %8 = vsyncpa [#allocation3], 0  ;;  %v22_v23 = vld [vmem:[%s3238_s0 + $0x38] sm:$0xff]  ;;  %v21_v24 = vld [vmem:[%s3238_s0 + $0x30] sm:$0xff]  ;;  %2168 = vmatprep.subr.bf16.mxu0 %v2463_v17  ;;  %2072 = vmatprep.subr.bf16.mxu1 %v2463_v17  ;;  %v2485_v25 = vpack.c.bf16 %v177_v20, %v174_v19  ;;  %v180_v26 = vand.u32 4294901760, %v135_v21  ;;  %v183_v27 = vand.u32 4294901760, %v136_v22  ;;  %v2498_v31 = vsub.f32 %v131_v9, %v168_v14 }
   0xc   :  { %2170 = vmatpush3.bf16.msra.mxu0 %v2463_v17  ;;  %2074 = vmatpush3.bf16.msra.mxu1 %v2463_v17  ;;  %v137_v28 = vld [vmem:[%s3240_s2 + $0x40] sm:$0xff]  ;;  %v138_v29 = vld [vmem:[%s3240_s2 + $0x48] sm:$0xff]  ;;  %v2496_v30 = vld [vmem:[%s3240_s2 + $0x50] sm:$0xff]  ;;  %v2503_v33 = vsub.f32 %v132_v10, %v171_v15  ;;  %v2519_v38 = vsub.f32 %v133_v11, %v174_v19  ;;  %v2521_v39 = vsub.f32 %v134_v16, %v177_v20  ;;  %s2394_s23 = smov [#allocation2]  }
   0xd   :  { %2172 = vmatprep.subr.bf16.mxu0 %v2465_v18  ;;  %2076 = vmatprep.subr.bf16.mxu1 %v2465_v18  ;;  %v24_v32 = vld [vmem:[%s3238_s0 + $0x48] sm:$0xff]  ;;  %v23_v34 = vld [vmem:[%s3238_s0 + $0x40] sm:$0xff]  ;;  %v2511_v35 = vld [vmem:[%s3240_s2 + $0x58] sm:$0xff]  ;;  %v419_v37 = vand.u32 4294901760, %v2498_v31  ;;  %v186_v40 = vand.u32 4294901760, %v137_v28  ;;  %v189_v41 = vand.u32 4294901760, %v138_v29  ;;  %v2529_v44 = vpack.c.bf16 %v183_v27, %v180_v26 }
   0xe   :  { %55 = vperm.xlu1 %2366, %v22_v23   ;;  %52 = vperm.xlu0 %2365, %v21_v24   ;;  %v2516_v36 = vld [vmem:[%s3240_s2 + $0x60] sm:$0xff]  ;;  %v192_v42 = vand.u32 4294901760, %v2496_v30  ;;  %v426_v43 = vand.u32 4294901760, %v2503_v33  ;;  %v433_v46 = vand.u32 4294901760, %v2519_v38  ;;  %v440_v47 = vand.u32 4294901760, %v2521_v39  ;;  %v26_v52 = vld [vmem:[%s3238_s0 + $0x58] sm:$0xff] }
   0xf   :  { %v420_v45 = vsub.f32 %v2498_v31, %v419_v37  ;;  %v195_v48 = vand.u32 4294901760, %v2511_v35  ;;  %v198_v49 = vand.u32 4294901760, %v2516_v36  ;;  %v25_v53 = vld [vmem:[%s3238_s0 + $0x50] sm:$0xff]  ;;  %v2548_v54 = vld [vmem:[%s3240_s2 + $0x68] sm:$0xff]  ;;  %v2559_v59 = vsub.f32 %v2432_v5, %v162_v7  ;;  %v144_v20 = vld [vmem:[%s3240_s2 + $0x78] sm:$0xff]  ;;  %s1468_s24 = sshll.u32 %s2394_s23, 4  ;;  %s1469_s24 = int_to_ptr.vmem [resolvable:$true] %s1468_s24 }
  0x10   :  { %2174 = vmatpush3.bf16.msra.mxu0 %v2465_v18  ;;  %2078 = vmatpush3.bf16.msra.mxu1 %v2465_v18  ;;  %v2536_v50 = vpack.c.bf16 %v426_v43, %v419_v37  ;;  %v427_v51 = vsub.f32 %v2503_v33, %v426_v43  ;;  %v2550_v56 = vpack.c.bf16 %v440_v47, %v433_v46  ;;  %v201_v3 = vand.u32 4294901760, %v2548_v54  ;;  %v28_v9 = vld [vmem:[%s3238_s0 + $0x68] sm:$0xff]  ;;  %s2367_s25 = scalar_lea.vmem %s1469_s24, 2048  ;;  %p2372_p1 = scmp.lt.s32.totalorder %s1469_s24, %s1469_s24 }
  0x11   :  { %2176 = vmatprep.subr.bf16.mxu0 %v2485_v25  ;;  %2080 = vmatprep.subr.bf16.mxu1 %v2485_v25  ;;  %v421_v55 = vand.u32 4294901760, %v420_v45  ;;  %v434_v57 = vsub.f32 %v2519_v38, %v433_v46  ;;  %v441_v58 = vsub.f32 %v2521_v39, %v440_v47  ;;  %v2561_v61 = vsub.f32 %v135_v21, %v180_v26  ;;  %p2368_p0 = scmp.ne.s32.totalorder %s1469_s24, %s2367_s25  ;;  %p2373_p2 = scmp.lt.s32.totalorder %s2367_s25, %s2367_s25 }
  0x12   :  { %61 = vperm.xlu1 %2366, %v24_v32   ;;  %58 = vperm.xlu0 %2365, %v23_v34   ;;  %v428_v60 = vand.u32 4294901760, %v427_v51  ;;  %v2563_v62 = vsub.f32 %v136_v22, %v183_v27  ;;  %v2567_v63 = vpack.c.bf16 %v189_v41, %v186_v40  ;;  %v2572_v0 = vsub.f32 %v2437_v6, %v165_v8  ;;  %v27_v6 = vld [vmem:[%s3238_s0 + $0x60] sm:$0xff]  ;;  %v2588_v8 = vld [vmem:[%s3240_s2 + $0x70] sm:$0xff] }
  0x13   :  { %v435_v1 = vand.u32 4294901760, %v434_v57  ;;  %v442_v2 = vand.u32 4294901760, %v441_v58  ;;  %v447_v5 = vand.u32 4294901760, %v2561_v61  ;;  %v2592_v11 = vsub.f32 %v137_v28, %v186_v40  ;;  %v29_v32 = vld [vmem:[%s3238_s0 + $0x70] sm:$0xff]  ;;  %p2374_p3 = por %p2373_p2, %p2372_p1 }
  0x14   :  { %2178 = vmatpush3.bf16.msra.mxu0 %v2485_v25  ;;  %2082 = vmatpush3.bf16.msra.mxu1 %v2485_v25  ;;  %v2575_v4 = vpack.c.bf16 %v428_v60, %v421_v55  ;;  %v454_v7 = vand.u32 4294901760, %v2563_v62  ;;  %v2594_v12 = vsub.f32 %v138_v29, %v189_v41  ;;  %v405_v13 = vand.u32 4294901760, %v2559_v59  ;;  %v30_v29 = vld [vmem:[%s3238_s0 + $0x78] sm:$0xff] }
  0x15   :  { %2180 = vmatprep.subr.bf16.mxu0 %v2529_v44  ;;  %2084 = vmatprep.subr.bf16.mxu1 %v2529_v44  ;;  %v2590_v10 = vpack.c.bf16 %v442_v2, %v435_v1  ;;  %v448_v15 = vsub.f32 %v2561_v61, %v447_v5  ;;  %v2609_v19 = vpack.c.bf16 %v195_v48, %v192_v42  ;;  %v412_v21 = vand.u32 4294901760, %v2572_v0  ;;  %p2375_p4 = pnand %p2374_p3, %p2368_p0 }
  0x16   :  { %67 = vperm.xlu1 %2366, %v26_v52   ;;  %64 = vperm.xlu0 %2365, %v25_v53   ;;  %v2599_v14 = vpack.c.bf16 %v454_v7, %v447_v5  ;;  %v455_v16 = vsub.f32 %v2563_v62, %v454_v7  ;;  %v461_v22 = vand.u32 4294901760, %v2592_v11  ;;  %v468_v23 = vand.u32 4294901760, %v2594_v12 }
  0x17   :  { %v2619_v24 = vpack.c.bf16 %v201_v3, %v198_v49  ;;  %v204_v26 = vand.u32 4294901760, %v2588_v8  ;;  %v449_v27 = vand.u32 4294901760, %v448_v15  ;;  %v2635_v41 = vsub.f32 %v2496_v30, %v192_v42 }
  0x18   :  { %2182 = vmatpush3.bf16.msra.mxu0 %v2529_v44  ;;  %2086 = vmatpush3.bf16.msra.mxu1 %v2529_v44  ;;  %v456_v28 = vand.u32 4294901760, %v455_v16  ;;  %v2628_v34 = vpack.c.bf16 %v468_v23, %v461_v22  ;;  %v462_v37 = vsub.f32 %v2592_v11, %v461_v22  ;;  %v469_v40 = vsub.f32 %v2594_v12, %v468_v23 }
  0x19   :  { %2184 = vmatprep.subr.bf16.mxu0 %v2567_v63  ;;  %2088 = vmatprep.subr.bf16.mxu1 %v2567_v63  ;;  %v207_v43 = vand.u32 4294901760, %v144_v20  ;;  %v406_v45 = vsub.f32 %v2559_v59, %v405_v13  ;;  %v481_v47 = vsub.f32 %v2511_v35, %v195_v48  ;;  %v413_v30 = vsub.f32 %v2572_v0, %v412_v21 }
  0x1a   :  { %73 = vperm.xlu1 %2366, %v28_v9   ;;  %70 = vperm.xlu0 %2365, %v27_v6   ;;  %v2640_v46 = vpack.c.bf16 %v456_v28, %v449_v27  ;;  %v463_v42 = vand.u32 4294901760, %v462_v37  ;;  %v470_v51 = vand.u32 4294901760, %v469_v40  ;;  %v475_v52 = vand.u32 4294901760, %v2635_v41 }
  0x1b   :  { %v482_v53 = vand.u32 4294901760, %v481_v47  ;;  %v488_v35 = vsub.f32 %v2516_v36, %v198_v49  ;;  %v495_v48 = vsub.f32 %v2548_v54, %v201_v3  ;;  %v2658_v58 = vpack.c.bf16 %v207_v43, %v204_v26 }
  0x1c   :  { %2186 = vmatpush3.bf16.msra.mxu0 %v2567_v63  ;;  %2090 = vmatpush3.bf16.msra.mxu1 %v2567_v63  ;;  %v2649_v55 = vpack.c.bf16 %v470_v51, %v463_v42  ;;  %v476_v57 = vsub.f32 %v2635_v41, %v475_v52  ;;  %v407_v60 = vand.u32 4294901760, %v406_v45  ;;  %v414_v5 = vand.u32 4294901760, %v413_v30 }
  0x1d   :  { %2188 = vmatprep.subr.bf16.mxu0 %v2609_v19  ;;  %2092 = vmatprep.subr.bf16.mxu1 %v2609_v19  ;;  %v2660_v1 = vpack.c.bf16 %v482_v53, %v475_v52  ;;  %v483_v2 = vsub.f32 %v481_v47, %v482_v53  ;;  %v489_v9 = vand.u32 4294901760, %v488_v35  ;;  %v496_v36 = vand.u32 4294901760, %v495_v48 }
  0x1e   :  { %79 = vperm.xlu1 %2366, %v30_v29   ;;  %76 = vperm.xlu0 %2365, %v29_v32   ;;  %v477_v7 = vand.u32 4294901760, %v476_v57  ;;  %v502_v15 = vsub.f32 %v2588_v8, %v204_v26  ;;  %v2669_v16 = vpack.c.bf16 %v412_v21, %v405_v13  ;;  %v509_v23 = vsub.f32 %v144_v20, %v207_v43 }
  0x1f   :  { %v484_v49 = vand.u32 4294901760, %v483_v2  ;;  %v2664_v54 = vpack.c.bf16 %v496_v36, %v489_v9  ;;  %v490_v3 = vsub.f32 %v488_v35, %v489_v9  ;;  %v497_v6 = vsub.f32 %v495_v48, %v496_v36 }
  0x20   :  { %2190 = vmatpush3.bf16.msra.mxu0 %v2609_v19  ;;  %2094 = vmatpush3.bf16.msra.mxu1 %v2609_v19  ;;  %v2675_v27 = vpack.c.bf16 %v414_v5, %v407_v60  ;;  %v503_v32 = vand.u32 4294901760, %v502_v15  ;;  %v510_v37 = vand.u32 4294901760, %v509_v23  ;;  %v2689_v45 = vpack.c.bf16 %v2572_v0, %v2559_v59 }
  0x21   :  { %2192 = vmatprep.subr.bf16.mxu0 %v2619_v24  ;;  %2096 = vmatprep.subr.bf16.mxu1 %v2619_v24  ;;  %v2671_v22 = vpack.c.bf16 %v484_v49, %v477_v7  ;;  %v491_v28 = vand.u32 4294901760, %v490_v3  ;;  %v498_v29 = vand.u32 4294901760, %v497_v6  ;;  %v2693_v30 = vpack.c.bf16 %v2503_v33, %v2498_v31 }
  0x22   :  { %v504_v26 = vsub.f32 %v502_v15, %v503_v32  ;;  %v2681_v13 = vpack.c.bf16 %v510_v37, %v503_v32  ;;  %v511_v20 = vsub.f32 %v509_v23, %v510_v37  ;;  %v2697_v42 = vpack.c.bf16 %v2521_v39, %v2519_v38 }
  0x23   :  { %v2677_v8 = vpack.c.bf16 %v498_v29, %v491_v28  ;;  %v2701_v51 = vpack.c.bf16 %v2563_v62, %v2561_v61  ;;  %v2705_v52 = vpack.c.bf16 %v2594_v12, %v2592_v11  ;;  %v2708_v53 = vpack.c.bf16 %v481_v47, %v2635_v41 }
  0x24   :  { %2194 = vmatpush3.bf16.msra.mxu0 %v2619_v24  ;;  %2098 = vmatpush3.bf16.msra.mxu1 %v2619_v24  ;;  %v505_v21 = vand.u32 4294901760, %v504_v26  ;;  %v512_v40 = vand.u32 4294901760, %v511_v20  ;;  %v2710_v59 = vpack.c.bf16 %v495_v48, %v488_v35  ;;  %v2712_v0 = vpack.c.bf16 %v509_v23, %v502_v15 }
  0x25   :  { %2196 = vmatprep.subr.bf16.mxu0 %v2658_v58  ;;  %2100 = vmatprep.subr.bf16.mxu1 %v2658_v58  ;;  %v31_v31 = vlaneseq  ;;  %v3242_v61 = vmov 0.0  }
  0x26   :  { %v2685_v43 = vpack.c.bf16 %v512_v40, %v505_v21 }
  0x27   :  { %v2714_v33 = vand.u32 127, %v31_v31 }
  0x28   :  { %2198 = vmatpush3.bf16.msra.mxu0 %v2658_v58  ;;  %2102 = vmatpush3.bf16.msra.mxu1 %v2658_v58 }
  0x29   :  { %2200 = vmatprep.subr.bf16.mxu0 %v2669_v16  ;;  %2104 = vmatprep.subr.bf16.mxu1 %v2675_v27 }
  0x81   :  { %v2716_v38 = vpop.permute.xlu1 %40  ;;  %v2718_v39 = vpop.permute.xlu0 %34 }
  0x82   :  { %vm83_vm0 = vcmp.eq.s32.totalorder %v2714_v33, %v2716_v38  ;;  %vm81_vm1 = vcmp.eq.s32.totalorder %v2714_v33, %v2718_v39 }
  0x83   :  { %v1481_v62 = vsel %vm83_vm0, 1.0, %v3242_v61  ;;  %v1479_v11 = vsel %vm81_vm1, 1.0, %v3242_v61 }
  0x84   :  { %v2732_v12 = vsub.f32 %v1481_v62, %v1481_v62  ;;  %v2734_v41 = vsub.f32 %v1479_v11, %v1479_v11 }
  0x85   :  { %v2736_v47 = vpop.permute.xlu1 %43  ;;  %v2738_v57 = vpop.permute.xlu0 %37 }
  0x86   :  { %vm84_vm2 = vcmp.eq.s32.totalorder %v2714_v33, %v2736_v47  ;;  %vm82_vm3 = vcmp.eq.s32.totalorder %v2714_v33, %v2738_v57  ;;  %v244_v35 = vand.u32 4294901760, %v2734_v41  ;;  %v264_v2 = vand.u32 4294901760, %v2732_v12  ;;  %v150_v47 = vld [vmem:[%s3239_s1 + $0x28] sm:$0xff] }
  0x87   :  { %v1482_v48 = vsel %vm84_vm2, 1.0, %v3242_v61  ;;  %v1480_v60 = vsel %vm82_vm3, 1.0, %v3242_v61 }
  0x88   :  { %v2754_v5 = vsub.f32 %v1482_v48, %v1482_v48  ;;  %v2756_v7 = vsub.f32 %v1480_v60, %v1480_v60  ;;  %1935 = vmatprep.mubr.f32.mxu0 %v244_v35  ;;  %v245_v9 = vsub.f32 %v2734_v41, %v244_v35  ;;  %v265_v29 = vsub.f32 %v2732_v12, %v264_v2 }
  0x89   :  { %v2759_v36 = vpop.permute.xlu1 %49  ;;  %v2761_v49 = vpop.permute.xlu0 %46 }
  0x8a   :  { %vm86_vm4 = vcmp.eq.s32.totalorder %v2714_v33, %v2759_v36  ;;  %vm85_vm5 = vcmp.eq.s32.totalorder %v2714_v33, %v2761_v49  ;;  %v246_v3 = vand.u32 4294901760, %v245_v9  ;;  %v254_v6 = vand.u32 4294901760, %v2756_v7 }
  0x8b   :  { %v1484_v15 = vsel %vm86_vm4, 1.0, %v3242_v61  ;;  %v1483_v23 = vsel %vm85_vm5, 1.0, %v3242_v61  ;;  %v274_v28 = vand.u32 4294901760, %v2754_v5  ;;  %v266_v35 = vand.u32 4294901760, %v265_v29 }
  0x8c   :  { %v2778_v32 = vsub.f32 %v1484_v15, %v1484_v15  ;;  %v2780_v37 = vsub.f32 %v1483_v23, %v1483_v23  ;;  %1767 = vmatprep.mubr.f32.mxu1 %v246_v3  ;;  %1936 = vmatmul.mubr.f32.vlgmr.msra.gmra.mrb[0].mxu0 %v254_v6  ;;  %v255_v26 = vsub.f32 %v2756_v7, %v254_v6 }
  0x8d   :  { %v2783_v20 = vpop.permute.xlu1 %55  ;;  %1938 = vmatprep.mubr.f32.mxu0 %v264_v2  ;;  %2202 = vmatpush3.bf16.msra.mxu0 %v2669_v16  ;;  %v2786_v21 = vpop.permute.xlu0 %52  ;;  %v275_v40 = vsub.f32 %v2754_v5, %v274_v28 }
  0x8e   :  { %vm88_vm6 = vcmp.eq.s32.totalorder %v2714_v33, %v2783_v20  ;;  %vm87_vm7 = vcmp.eq.s32.totalorder %v2714_v33, %v2786_v21  ;;  %v256_v31 = vand.u32 4294901760, %v255_v26  ;;  %2204 = vmatprep.subr.bf16.mxu0 %v2536_v50  ;;  %v284_v62 = vand.u32 4294901760, %v2780_v37 }
  0x8f   :  { %v1486_v16 = vsel %vm88_vm6, 1.0, %v3242_v61  ;;  %v1485_v11 = vsel %vm87_vm7, 1.0, %v3242_v61  ;;  %v294_v48 = vand.u32 4294901760, %v2778_v32  ;;  %v276_v15 = vand.u32 4294901760, %v275_v40 }
  0x90   :  { %v2804_v60 = vsub.f32 %v1486_v16, %v1486_v16  ;;  %v2806_v2 = vsub.f32 %v1485_v11, %v1485_v11  ;;  %1768 = vmatmul.mubr.f32.vlgmr.msra.gmra.mrb[0].mxu1 %v256_v31  ;;  %1939 = vmatmul.mubr.f32.gmra.mrb[2].mxu0 %v274_v28  ;;  %v285_v9 = vsub.f32 %v2780_v37, %v284_v62 }
  0x91   :  { %2106 = vmatpush3.bf16.msra.mxu1 %v2675_v27  ;;  %v2810_v3 = vpop.permute.xlu1 %61  ;;  %1770 = vmatprep.mubr.f32.mxu1 %v266_v35  ;;  %v2812_v6 = vpop.permute.xlu0 %58  ;;  %v295_v23 = vsub.f32 %v2778_v32, %v294_v48 }
  0x92   :  { %3249 = vst [vmem:[#allocation5_spill] sm:$0xff] %v2804_v60  ;;  %3250 = vst [vmem:[#allocation6_spill] sm:$0xff] %v2806_v2  ;;  %vm90_vm8 = vcmp.eq.s32.totalorder %v2714_v33, %v2810_v3  ;;  %1941 = vmatprep.mubr.f32.mxu0 %v284_v62  ;;  %2206 = vmatpush3.bf16.msra.mxu0 %v2536_v50  ;;  %vm89_vm9 = vcmp.eq.s32.totalorder %v2714_v33, %v2812_v6  ;;  %v286_v28 = vand.u32 4294901760, %v285_v9  ;;  %v152_v3 = vld [vmem:[%s3239_s1 + $0x38] sm:$0xff] }
  0x93   :  { %v304_v27 = vand.u32 4294901760, %v2806_v2  ;;  %v1488_v29 = vsel %vm90_vm8, 1.0, %v3242_v61  ;;  %v1487_v26 = vsel %vm89_vm9, 1.0, %v3242_v61  ;;  %2108 = vmatprep.subr.bf16.mxu1 %v2575_v4  ;;  %2208 = vmatprep.subr.bf16.mxu0 %v2550_v56  ;;  %v314_v50 = vand.u32 4294901760, %v2804_v60 }
  0x94   :  { %v2832_v40 = vsub.f32 %v1488_v29, %v1488_v29  ;;  %v2834_v31 = vsub.f32 %v1487_v26, %v1487_v26  ;;  %1771 = vmatmul.mubr.f32.gmra.mrb[2].mxu1 %v276_v15  ;;  %1942 = vmatmul.mubr.f32.gmra.mrb[4].mxu0 %v294_v48  ;;  %v296_v35 = vand.u32 4294901760, %v295_v23 }
  0x95   :  { %v305_v62 = vsub.f32 %v2806_v2, %v304_v27  ;;  %2110 = vmatpush3.bf16.msra.mxu1 %v2575_v4  ;;  %v2838_v16 = vpop.permute.xlu1 %67  ;;  %1773 = vmatprep.mubr.f32.mxu1 %v286_v28  ;;  %v2840_v11 = vpop.permute.xlu0 %64  ;;  %v315_v9 = vsub.f32 %v2804_v60, %v314_v50 }
  0x96   :  { %3251 = vst [vmem:[#allocation7_spill] sm:$0xff] %v2832_v40  ;;  %3252 = vst [vmem:[#allocation8_spill] sm:$0xff] %v2834_v31  ;;  %vm92_vm10 = vcmp.eq.s32.totalorder %v2714_v33, %v2838_v16  ;;  %1944 = vmatprep.mubr.f32.mxu0 %v304_v27  ;;  %2210 = vmatpush3.bf16.msra.mxu0 %v2550_v56  ;;  %vm91_vm11 = vcmp.eq.s32.totalorder %v2714_v33, %v2840_v11  ;;  %v324_v4 = vand.u32 4294901760, %v2834_v31  ;;  %v151_v16 = vld [vmem:[%s3239_s1 + $0x30] sm:$0xff] }
  0x97   :  { %v306_v48 = vand.u32 4294901760, %v305_v62  ;;  %v1490_v15 = vsel %vm92_vm10, 1.0, %v3242_v61  ;;  %v1489_v23 = vsel %vm91_vm11, 1.0, %v3242_v61  ;;  %2112 = vmatprep.subr.bf16.mxu1 %v2590_v10  ;;  %2212 = vmatprep.subr.bf16.mxu0 %v2599_v14  ;;  %v334_v56 = vand.u32 4294901760, %v2832_v40 }
  0x98   :  { %v2860_v28 = vsub.f32 %v1490_v15, %v1490_v15  ;;  %v2862_v27 = vsub.f32 %v1489_v23, %v1489_v23  ;;  %1774 = vmatmul.mubr.f32.gmra.mrb[4].mxu1 %v296_v35  ;;  %1945 = vmatmul.mubr.f32.gmra.mrb[6].mxu0 %v314_v50  ;;  %v325_v29 = vsub.f32 %v2834_v31, %v324_v4  ;;  %v316_v61 = vand.u32 4294901760, %v315_v9 }
  0x99   :  { %2114 = vmatpush3.bf16.msra.mxu1 %v2590_v10  ;;  %v2866_v26 = vpop.permute.xlu1 %73  ;;  %1776 = vmatprep.mubr.f32.mxu1 %v306_v48  ;;  %v2868_v62 = vpop.permute.xlu0 %70  ;;  %v335_v60 = vsub.f32 %v2832_v40, %v334_v56  ;;  %v3254_v35 = vmov 0.0  }
  0x9a   :  { %3253 = vst [vmem:[#allocation9_spill] sm:$0xff] %v2860_v28  ;;  %vm94_vm12 = vcmp.eq.s32.totalorder %v2714_v33, %v2866_v26  ;;  %1947 = vmatprep.mubr.f32.mxu0 %v324_v4  ;;  %2214 = vmatpush3.bf16.msra.mxu0 %v2599_v14  ;;  %vm93_vm13 = vcmp.eq.s32.totalorder %v2714_v33, %v2868_v62  ;;  %v326_v50 = vand.u32 4294901760, %v325_v29  ;;  %v344_v10 = vand.u32 4294901760, %v2862_v27 }
  0x9b   :  { %v1492_v48 = vsel %vm94_vm12, 1.0, %v3254_v35  ;;  %v1491_v9 = vsel %vm93_vm13, 1.0, %v3254_v35  ;;  %2116 = vmatprep.subr.bf16.mxu1 %v2640_v46  ;;  %2216 = vmatprep.subr.bf16.mxu0 %v2628_v34  ;;  %v354_v14 = vand.u32 4294901760, %v2860_v28  ;;  %v336_v31 = vand.u32 4294901760, %v335_v60 }
  0x9c   :  { %v2888_v4 = vsub.f32 %v1492_v48, %v1492_v48  ;;  %v2890_v15 = vsub.f32 %v1491_v9, %v1491_v9  ;;  %1777 = vmatmul.mubr.f32.gmra.mrb[6].mxu1 %v316_v61  ;;  %1948 = vmatmul.mubr.f32.gmra.mrb[8].mxu0 %v334_v56  ;;  %v345_v23 = vsub.f32 %v2862_v27, %v344_v10 }
  0x9d   :  { %2118 = vmatpush3.bf16.msra.mxu1 %v2640_v46  ;;  %v2894_v29 = vpop.permute.xlu1 %79  ;;  %1779 = vmatprep.mubr.f32.mxu1 %v326_v50  ;;  %v2896_v40 = vpop.permute.xlu0 %76  ;;  %v355_v2 = vsub.f32 %v2860_v28, %v354_v14 }
  0x9e   :  { %vm96_vm14 = vcmp.eq.s32.totalorder %v2714_v33, %v2894_v29  ;;  %1950 = vmatprep.mubr.f32.mxu0 %v344_v10  ;;  %2218 = vmatpush3.bf16.msra.mxu0 %v2628_v34  ;;  %vm95_vm15 = vcmp.eq.s32.totalorder %v2714_v33, %v2896_v40  ;;  %v346_v61 = vand.u32 4294901760, %v345_v23  ;;  %v364_v46 = vand.u32 4294901760, %v2890_v15 }
  0x9f   :  { %v1494_v56 = vsel %vm96_vm14, 1.0, %v3254_v35  ;;  %v1493_v60 = vsel %vm95_vm15, 1.0, %v3254_v35  ;;  %2120 = vmatprep.subr.bf16.mxu1 %v2649_v55  ;;  %2220 = vmatprep.subr.bf16.mxu0 %v2660_v1  ;;  %v374_v34 = vand.u32 4294901760, %v2888_v4  ;;  %v356_v9 = vand.u32 4294901760, %v355_v2 }
  0xa0   :  { %v2916_v50 = vsub.f32 %v1494_v56, %v1494_v56  ;;  %v2918_v10 = vsub.f32 %v1493_v60, %v1493_v60  ;;  %1780 = vmatmul.mubr.f32.gmra.mrb[8].mxu1 %v336_v31  ;;  %1951 = vmatmul.mubr.f32.gmra.mrb[10].mxu0 %v354_v14  ;;  %v365_v48 = vsub.f32 %v2890_v15, %v364_v46 }
  0xa1   :  { %2122 = vmatpush3.bf16.msra.mxu1 %v2649_v55  ;;  %1782 = vmatprep.mubr.f32.mxu1 %v346_v61  ;;  %v375_v28 = vsub.f32 %v2888_v4, %v374_v34  ;;  %v153_v61 = vld [vmem:[%s3239_s1 + $0x40] sm:$0xff] }
  0xa2   :  { %1953 = vmatprep.mubr.f32.mxu0 %v364_v46  ;;  %2222 = vmatpush3.bf16.msra.mxu0 %v2660_v1  ;;  %v366_v35 = vand.u32 4294901760, %v365_v48  ;;  %v384_v23 = vand.u32 4294901760, %v2918_v10  ;;  %v394_v56 = vand.u32 4294901760, %v2916_v50 }
  0xa3   :  { %2124 = vmatprep.subr.bf16.mxu1 %v2671_v22  ;;  %2224 = vmatprep.subr.bf16.mxu0 %v2664_v54  ;;  %v376_v1 = vand.u32 4294901760, %v375_v28 }
  0xa4   :  { %1783 = vmatmul.mubr.f32.gmra.mrb[10].mxu1 %v356_v9  ;;  %1954 = vmatmul.mubr.f32.gmra.mrb[12].mxu0 %v374_v34  ;;  %v385_v55 = vsub.f32 %v2918_v10, %v384_v23  ;;  %v395_v31 = vsub.f32 %v2916_v50, %v394_v56  ;;  %v156_v9 = vld [vmem:[%s3239_s1 + $0x58] sm:$0xff] }
  0xa5   :  { %2126 = vmatpush3.bf16.msra.mxu1 %v2671_v22  ;;  %1785 = vmatprep.mubr.f32.mxu1 %v366_v35  ;;  %v2393_v22 = vmov 1.0  }
  0xa6   :  { %1956 = vmatprep.mubr.f32.mxu0 %v384_v23  ;;  %2226 = vmatpush3.bf16.msra.mxu0 %v2664_v54  ;;  %v386_v2 = vand.u32 4294901760, %v385_v55  ;;  %v396_v54 = vand.u32 4294901760, %v395_v31 }
  0xa7   :  { %2128 = vmatprep.subr.bf16.mxu1 %v2677_v8  ;;  %2228 = vmatprep.subr.bf16.mxu0 %v2681_v13 }
  0xa8   :  { %1786 = vmatmul.mubr.f32.gmra.mrb[12].mxu1 %v376_v1  ;;  %1957 = vmatmul.mubr.f32.gmra.mrb[14].mxu0 %v394_v56  ;;  %v155_v56 = vld [vmem:[%s3239_s1 + $0x50] sm:$0xff] }
  0xa9   :  { %2130 = vmatpush3.bf16.msra.mxu1 %v2677_v8  ;;  %1788 = vmatprep.mubr.f32.mxu1 %v386_v2  ;;  %v145_v8 = vld [vmem:[%s3239_s1] sm:$0xff] }
  0xaa   :  { %2230 = vmatpush3.bf16.msra.mxu0 %v2681_v13  ;;  %1991 = vmatprep.mubr.msk.f32.mxu0 %vm81_vm1, %v2393_v22 }
  0xab   :  { %2132 = vmatprep.subr.bf16.mxu1 %v2685_v43  ;;  %2232 = vmatprep.subr.bf16.mxu0 %v2463_v17 }
  0xac   :  { %1789 = vmatmul.mubr.f32.gmra.mrb[14].mxu1 %v396_v54 }
  0xad   :  { %2134 = vmatpush3.bf16.msra.mxu1 %v2685_v43  ;;  %1992 = vmatmul.mubr.msk.f32.vlgmr.msra.gmra.mrb[0].mxu0 %vm82_vm3, %v2393_v22 }
  0xae   :  { %1823 = vmatprep.mubr.msk.f32.mxu1 %vm81_vm1, %v2393_v22  ;;  %1994 = vmatprep.mubr.msk.f32.mxu0 %vm83_vm0, %v2393_v22 }
  0xaf   :  { %2234 = vmatpush3.bf16.msra.mxu0 %v2463_v17  ;;  %2136 = vmatprep.subr.bf16.mxu1 %v2689_v45  ;;  %v3255_v17 = vld [vmem:[#allocation6_spill] sm:$0xff] }
  0xb0   :  { %1824 = vmatmul.mubr.msk.f32.vlgmr.msra.gmra.mrb[0].mxu1 %vm82_vm3, %v2393_v22  ;;  %2236 = vmatprep.subr.bf16.mxu0 %v2465_v18 }
  0xb1   :  { %2138 = vmatpush3.bf16.msra.mxu1 %v2689_v45  ;;  %1995 = vmatmul.mubr.msk.f32.gmra.mrb[2].mxu0 %vm84_vm2, %v2393_v22 }
  0xb2   :  { %1826 = vmatprep.mubr.msk.f32.mxu1 %vm83_vm0, %v2393_v22  ;;  %1997 = vmatprep.mubr.msk.f32.mxu0 %vm85_vm5, %v2393_v22 }
  0xb3   :  { %2238 = vmatpush3.bf16.msra.mxu0 %v2465_v18  ;;  %2140 = vmatprep.subr.bf16.mxu1 %v2693_v30  ;;  %v3256_v18 = vld [vmem:[#allocation5_spill] sm:$0xff] }
  0xb4   :  { %1827 = vmatmul.mubr.msk.f32.gmra.mrb[2].mxu1 %vm84_vm2, %v2393_v22  ;;  %2240 = vmatprep.subr.bf16.mxu0 %v2485_v25 }
  0xb5   :  { %2142 = vmatpush3.bf16.msra.mxu1 %v2693_v30  ;;  %1998 = vmatmul.mubr.msk.f32.gmra.mrb[4].mxu0 %vm86_vm4, %v2393_v22 }
  0xb6   :  { %1829 = vmatprep.mubr.msk.f32.mxu1 %vm85_vm5, %v2393_v22  ;;  %2000 = vmatprep.mubr.msk.f32.mxu0 %vm87_vm7, %v2393_v22 }
  0xb7   :  { %2242 = vmatpush3.bf16.msra.mxu0 %v2485_v25  ;;  %2144 = vmatprep.subr.bf16.mxu1 %v2697_v42  ;;  %v3257_v25 = vld [vmem:[#allocation8_spill] sm:$0xff] }
  0xb8   :  { %1830 = vmatmul.mubr.msk.f32.gmra.mrb[4].mxu1 %vm86_vm4, %v2393_v22  ;;  %2244 = vmatprep.subr.bf16.mxu0 %v2529_v44 }
  0xb9   :  { %2146 = vmatpush3.bf16.msra.mxu1 %v2697_v42  ;;  %2001 = vmatmul.mubr.msk.f32.gmra.mrb[6].mxu0 %vm88_vm6, %v2393_v22 }
  0xba   :  { %1832 = vmatprep.mubr.msk.f32.mxu1 %vm87_vm7, %v2393_v22  ;;  %2003 = vmatprep.mubr.msk.f32.mxu0 %vm89_vm9, %v2393_v22 }
  0xbb   :  { %2246 = vmatpush3.bf16.msra.mxu0 %v2529_v44  ;;  %2148 = vmatprep.subr.bf16.mxu1 %v2701_v51  ;;  %v3258_v44 = vld [vmem:[#allocation7_spill] sm:$0xff] }
  0xbc   :  { %1833 = vmatmul.mubr.msk.f32.gmra.mrb[6].mxu1 %vm88_vm6, %v2393_v22  ;;  %2248 = vmatprep.subr.bf16.mxu0 %v2567_v63 }
  0xbd   :  { %2150 = vmatpush3.bf16.msra.mxu1 %v2701_v51  ;;  %2004 = vmatmul.mubr.msk.f32.gmra.mrb[8].mxu0 %vm90_vm8, %v2393_v22  ;;  %v148_v51 = vld [vmem:[%s3239_s1 + $0x18] sm:$0xff] }
  0xbe   :  { %1835 = vmatprep.mubr.msk.f32.mxu1 %vm89_vm9, %v2393_v22  ;;  %2006 = vmatprep.mubr.msk.f32.mxu0 %vm91_vm11, %v2393_v22 }
  0xbf   :  { %2250 = vmatpush3.bf16.msra.mxu0 %v2567_v63  ;;  %2152 = vmatprep.subr.bf16.mxu1 %v2705_v52  ;;  %v3259_v63 = vld [vmem:[#allocation9_spill] sm:$0xff] }
  0xc0   :  { %1836 = vmatmul.mubr.msk.f32.gmra.mrb[8].mxu1 %vm90_vm8, %v2393_v22  ;;  %2252 = vmatprep.subr.bf16.mxu0 %v2609_v19 }
  0xc1   :  { %2154 = vmatpush3.bf16.msra.mxu1 %v2705_v52  ;;  %2007 = vmatmul.mubr.msk.f32.gmra.mrb[10].mxu0 %vm92_vm10, %v2393_v22 }
  0xc2   :  { %1838 = vmatprep.mubr.msk.f32.mxu1 %vm91_vm11, %v2393_v22  ;;  %2009 = vmatprep.mubr.msk.f32.mxu0 %vm93_vm13, %v2393_v22 }
  0xc3   :  { %2254 = vmatpush3.bf16.msra.mxu0 %v2609_v19  ;;  %2156 = vmatprep.subr.bf16.mxu1 %v2708_v53 }
  0xc4   :  { %1839 = vmatmul.mubr.msk.f32.gmra.mrb[10].mxu1 %vm92_vm10, %v2393_v22  ;;  %2256 = vmatprep.subr.bf16.mxu0 %v2619_v24 }
  0xc5   :  { %2158 = vmatpush3.bf16.msra.mxu1 %v2708_v53  ;;  %2010 = vmatmul.mubr.msk.f32.gmra.mrb[12].mxu0 %vm94_vm12, %v2393_v22 }
  0xc6   :  { %1841 = vmatprep.mubr.msk.f32.mxu1 %vm93_vm13, %v2393_v22  ;;  %2012 = vmatprep.mubr.msk.f32.mxu0 %vm95_vm15, %v2393_v22 }
  0xc7   :  { %2258 = vmatpush3.bf16.msra.mxu0 %v2619_v24  ;;  %2160 = vmatprep.subr.bf16.mxu1 %v2710_v59  ;;  %v146_v24 = vld [vmem:[%s3239_s1 + $0x8] sm:$0xff] }
  0xc8   :  { %1842 = vmatmul.mubr.msk.f32.gmra.mrb[12].mxu1 %vm94_vm12, %v2393_v22  ;;  %2260 = vmatprep.subr.bf16.mxu0 %v2658_v58 }
  0xc9   :  { %2162 = vmatpush3.bf16.msra.mxu1 %v2710_v59  ;;  %2013 = vmatmul.mubr.msk.f32.gmra.mrb[14].mxu0 %vm96_vm14, %v2393_v22  ;;  %v147_v59 = vld [vmem:[%s3239_s1 + $0x10] sm:$0xff] }
  0xca   :  { %1844 = vmatprep.mubr.msk.f32.mxu1 %vm95_vm15, %v2393_v22  ;;  %2047 = vmatprep.mubr.msk.f32.mxu0 %vm81_vm1, %v2393_v22 }
  0xcb   :  { %2262 = vmatpush3.bf16.msra.mxu0 %v2658_v58  ;;  %2164 = vmatprep.subr.bf16.mxu1 %v2712_v0 }
  0xcc   :  { %1845 = vmatmul.mubr.msk.f32.gmra.mrb[14].mxu1 %vm96_vm14, %v2393_v22 }
  0xcd   :  { %2166 = vmatpush3.bf16.msra.mxu1 %v2712_v0  ;;  %1879 = vmatprep.mubr.f32.mxu1 %v2734_v41 }
  0xce   :  { %2048 = vmatmul.mubr.msk.f32.vlgmr.msra.gmra.mrb[0].mxu0 %vm82_vm3, %v2393_v22 }
  0xcf   :  { %2050 = vmatprep.mubr.msk.f32.mxu0 %vm83_vm0, %v2393_v22 }
  0xd0   :  { %1880 = vmatmul.mubr.f32.vlgmr.msra.gmra.mrb[0].mxu1 %v2756_v7  ;;  %v149_v7 = vld [vmem:[%s3239_s1 + $0x20] sm:$0xff] }
  0xd1   :  { %1882 = vmatprep.mubr.f32.mxu1 %v2732_v12 }
  0xd2   :  { %2051 = vmatmul.mubr.msk.f32.gmra.mrb[2].mxu0 %vm84_vm2, %v2393_v22 }
  0xd3   :  { %2053 = vmatprep.mubr.msk.f32.mxu0 %vm85_vm5, %v2393_v22 }
  0xd4   :  { %1883 = vmatmul.mubr.f32.gmra.mrb[2].mxu1 %v2754_v5 }
  0xd5   :  { %1885 = vmatprep.mubr.f32.mxu1 %v2780_v37 }
  0xd6   :  { %2054 = vmatmul.mubr.msk.f32.gmra.mrb[4].mxu0 %vm86_vm4, %v2393_v22 }
  0xd7   :  { %2056 = vmatprep.mubr.msk.f32.mxu0 %vm87_vm7, %v2393_v22 }
  0xd8   :  { %1886 = vmatmul.mubr.f32.gmra.mrb[4].mxu1 %v2778_v32 }
  0xd9   :  { %1888 = vmatprep.mubr.f32.mxu1 %v3255_v17  ;;  %v158_v17 = vld [vmem:[%s3239_s1 + $0x68] sm:$0xff] }
  0xda   :  { %2057 = vmatmul.mubr.msk.f32.gmra.mrb[6].mxu0 %vm88_vm6, %v2393_v22 }
  0xdb   :  { %2059 = vmatprep.mubr.msk.f32.mxu0 %vm89_vm9, %v2393_v22 }
  0xdc   :  { %1889 = vmatmul.mubr.f32.gmra.mrb[6].mxu1 %v3256_v18 }
  0xdd   :  { %1891 = vmatprep.mubr.f32.mxu1 %v3257_v25 }
  0xde   :  { %2060 = vmatmul.mubr.msk.f32.gmra.mrb[8].mxu0 %vm90_vm8, %v2393_v22 }
  0xdf   :  { %2062 = vmatprep.mubr.msk.f32.mxu0 %vm91_vm11, %v2393_v22 }
  0xe0   :  { %1892 = vmatmul.mubr.f32.gmra.mrb[8].mxu1 %v3258_v44  ;;  %v157_v44 = vld [vmem:[%s3239_s1 + $0x60] sm:$0xff] }
  0xe1   :  { %1894 = vmatprep.mubr.f32.mxu1 %v2862_v27 }
  0xe2   :  { %2063 = vmatmul.mubr.msk.f32.gmra.mrb[10].mxu0 %vm92_vm10, %v2393_v22 }
  0xe3   :  { %2065 = vmatprep.mubr.msk.f32.mxu0 %vm93_vm13, %v2393_v22 }
  0xe4   :  { %1895 = vmatmul.mubr.f32.gmra.mrb[10].mxu1 %v3259_v63 }
  0xe5   :  { %1897 = vmatprep.mubr.f32.mxu1 %v2890_v15 }
  0xe6   :  { %2066 = vmatmul.mubr.msk.f32.gmra.mrb[12].mxu0 %vm94_vm12, %v2393_v22 }
  0xe7   :  { %2068 = vmatprep.mubr.msk.f32.mxu0 %vm95_vm15, %v2393_v22 }
  0xe8   :  { %1898 = vmatmul.mubr.f32.gmra.mrb[12].mxu1 %v2888_v4  ;;  %v154_v4 = vld [vmem:[%s3239_s1 + $0x48] sm:$0xff] }
  0xe9   :  { %1900 = vmatprep.mubr.f32.mxu1 %v2918_v10 }
  0xea   :  { %2069 = vmatmul.mubr.msk.f32.gmra.mrb[14].mxu0 %vm96_vm14, %v2393_v22 }
  0xec   :  { %1901 = vmatmul.mubr.f32.gmra.mrb[14].mxu1 %v2916_v50 }
 0x1a1   :  { %v2049_v19 = vpop.f32.mrb[0].mxu0 }
 0x1a2   :  { %v1353_v58 = vpop.f32.mrb[1].mxu0 }
 0x1a3   :  { %v1881_v13 = vpop.f32.mrb[0].mxu1 }
 0x1a4   :  { %v2263_v43 = vadd.f32 %v1881_v13, %v146_v24  ;;  %v743_v45 = vpop.f32.mrb[1].mxu1 }
 0x1a5   :  { %v2052_v30 = vpop.f32.mrb[2].mxu0  ;;  %v2265_v42 = vadd.f32 %v743_v45, %v145_v8 }
 0x1a6   :  { %v2264_v52 = vadd.f32 %v2263_v43, %v2049_v19  ;;  %v1365_v53 = vpop.f32.mrb[3].mxu0  ;;  %v160_v43 = vld [vmem:[%s3239_s1 + $0x78] sm:$0xff] }
 0x1a7   :  { %v2266_v0 = vadd.f32 %v2265_v42, %v1353_v58  ;;  %v1884_v33 = vpop.f32.mrb[2].mxu1  ;;  %v159_v42 = vld [vmem:[%s3239_s1 + $0x70] sm:$0xff] }
 0x1a8   :  { %1448 = vst [vmem:[#allocation2 + $0x8] sm:$0xff] %v2264_v52  ;;  %v2267_v38 = vadd.f32 %v1884_v33, %v148_v51  ;;  %v757_v39 = vpop.f32.mrb[3].mxu1 }
 0x1a9   :  { %1447 = vst [vmem:[#allocation2] sm:$0xff] %v2266_v0  ;;  %v2055_v12 = vpop.f32.mrb[4].mxu0  ;;  %v2269_v41 = vadd.f32 %v757_v39, %v147_v59 }
 0x1aa   :  { %v2268_v57 = vadd.f32 %v2267_v38, %v2052_v30  ;;  %v1377_v5 = vpop.f32.mrb[5].mxu0 }
 0x1ab   :  { %v2270_v36 = vadd.f32 %v2269_v41, %v1365_v53  ;;  %v1887_v49 = vpop.f32.mrb[4].mxu1 }
 0x1ac   :  { %1450 = vst [vmem:[#allocation2 + $0x18] sm:$0xff] %v2268_v57  ;;  %v2271_v32 = vadd.f32 %v1887_v49, %v150_v47  ;;  %v771_v37 = vpop.f32.mrb[5].mxu1 }
 0x1ad   :  { %1449 = vst [vmem:[#allocation2 + $0x10] sm:$0xff] %v2270_v36  ;;  %v2058_v20 = vpop.f32.mrb[6].mxu0  ;;  %v2273_v21 = vadd.f32 %v771_v37, %v149_v7 }
 0x1ae   :  { %v2272_v6 = vadd.f32 %v2271_v32, %v2055_v12  ;;  %v1389_v40 = vpop.f32.mrb[7].mxu0 }
 0x1af   :  { %v2274_v11 = vadd.f32 %v2273_v21, %v1377_v5  ;;  %v1890_v28 = vpop.f32.mrb[6].mxu1 }
 0x1b0   :  { %1452 = vst [vmem:[#allocation2 + $0x28] sm:$0xff] %v2272_v6  ;;  %v2275_v27 = vadd.f32 %v1890_v28, %v152_v3  ;;  %v785_v26 = vpop.f32.mrb[7].mxu1 }
 0x1b1   :  { %1451 = vst [vmem:[#allocation2 + $0x20] sm:$0xff] %v2274_v11  ;;  %v2061_v62 = vpop.f32.mrb[8].mxu0  ;;  %v2277_v14 = vadd.f32 %v785_v26, %v151_v16 }
 0x1b2   :  { %v2276_v15 = vadd.f32 %v2275_v27, %v2058_v20  ;;  %v1401_v29 = vpop.f32.mrb[9].mxu0 }
 0x1b3   :  { %v2278_v46 = vadd.f32 %v2277_v14, %v1389_v40  ;;  %v1893_v60 = vpop.f32.mrb[8].mxu1 }
 0x1b4   :  { %1454 = vst [vmem:[#allocation2 + $0x38] sm:$0xff] %v2276_v15  ;;  %v2279_v34 = vadd.f32 %v1893_v60, %v154_v4  ;;  %v799_v50 = vpop.f32.mrb[9].mxu1 }
 0x1b5   :  { %1453 = vst [vmem:[#allocation2 + $0x30] sm:$0xff] %v2278_v46  ;;  %v2064_v10 = vpop.f32.mrb[10].mxu0  ;;  %v2281_v48 = vadd.f32 %v799_v50, %v153_v61 }
 0x1b6   :  { %v2280_v35 = vadd.f32 %v2279_v34, %v2061_v62  ;;  %v1413_v23 = vpop.f32.mrb[11].mxu0 }
 0x1b7   :  { %v2282_v55 = vadd.f32 %v2281_v48, %v1401_v29  ;;  %v1896_v1 = vpop.f32.mrb[10].mxu1 }
 0x1b8   :  { %1456 = vst [vmem:[#allocation2 + $0x48] sm:$0xff] %v2280_v35  ;;  %v2283_v2 = vadd.f32 %v1896_v1, %v156_v9  ;;  %v813_v31 = vpop.f32.mrb[11].mxu1 }
 0x1b9   :  { %1455 = vst [vmem:[#allocation2 + $0x40] sm:$0xff] %v2282_v55  ;;  %v2067_v22 = vpop.f32.mrb[12].mxu0  ;;  %v2285_v54 = vadd.f32 %v813_v31, %v155_v56 }
 0x1ba   :  { %v2284_v18 = vadd.f32 %v2283_v2, %v2064_v10  ;;  %v1425_v25 = vpop.f32.mrb[13].mxu0 }
 0x1bb   :  { %v2286_v63 = vadd.f32 %v2285_v54, %v1413_v23  ;;  %v1899_v19 = vpop.f32.mrb[12].mxu1 }
 0x1bc   :  { %1458 = vst [vmem:[#allocation2 + $0x58] sm:$0xff] %v2284_v18  ;;  %v2287_v24 = vadd.f32 %v1899_v19, %v158_v17  ;;  %v827_v58 = vpop.f32.mrb[13].mxu1 }
 0x1bd   :  { %1457 = vst [vmem:[#allocation2 + $0x50] sm:$0xff] %v2286_v63  ;;  %v2070_v8 = vpop.f32.mrb[14].mxu0  ;;  %v2289_v13 = vadd.f32 %v827_v58, %v157_v44 }
 0x1be   :  { %v2288_v45 = vadd.f32 %v2287_v24, %v2067_v22  ;;  %v1437_v30 = vpop.f32.mrb[15].mxu0 }
 0x1bf   :  { %v2290_v51 = vadd.f32 %v2289_v13, %v1425_v25  ;;  %v1902_v52 = vpop.f32.mrb[14].mxu1 }
 0x1c0   :  { %1460 = vst [vmem:[#allocation2 + $0x68] sm:$0xff] %v2288_v45  ;;  %v2291_v53 = vadd.f32 %v1902_v52, %v160_v43  ;;  %v841_v59 = vpop.f32.mrb[15].mxu1 }
 0x1c1   :  { %1459 = vst [vmem:[#allocation2 + $0x60] sm:$0xff] %v2290_v51  ;;  %v2293_v0 = vadd.f32 %v841_v59, %v159_v42 }
 0x1c2   :  { %v2292_v33 = vadd.f32 %v2291_v53, %v2070_v8 }
 0x1c3   :  { %v2294_v38 = vadd.f32 %v2293_v0, %v1437_v30 }
 0x1c4   :  { %1462 = vst [vmem:[#allocation2 + $0x78] sm:$0xff] %v2292_v33 }
 0x1c5   :  { %1461 = vst [vmem:[#allocation2 + $0x70] sm:$0xff] %v2294_v38 }
 0x1c6   :  { %2378 = shalt.err (!%p2375_p4)
}
 0x1c7   :  { %s2379_s27 = scalar_lea.hbm %s3241_s3, 2048 }
 0x1c8   :  { %p2380_p5 = scmp.ne.s32.totalorder %s3241_s3, %s2379_s27  ;;  %p2383_p6 = scmp.lt.u32.totalorder %s2379_s27, %s3241_s3 }
 0x1ca   :  { %p2385_p7 = pnand %p2383_p6, %p2380_p5 }
 0x1cc   :  { %2388 = shalt.err (!%p2385_p7)
}
 0x1cd   :  { %s2395_s5 = smov 128   ;;  %s2396_s6 = smov 8  }
 0x1ce   :  { %1474 = dma.vmem_to_hbm [thread:$0]  %s1469_s24, 2048, %s3241_s3, [#allocation3], %s2395_s5, %s2395_s5, %s2396_s6  }
 0x1cf   :  { %2389 = dma.done.wait [#allocation3], 2048  }
 0x1d0   :  { %2390 = vsyncadd [#allocation3], 4294965248 }
 0x1d1   :  { %1478 = vsyncpa [#allocation3], 1 }

</bundles_post_ra>
